<compile_context>
chip_gen: v7x
topology: tpu7x:2x2x1
jax: 0.10.0
libtpu: 0.0.40
codegen_flags: <defaults>
</compile_context>

<pallas_src>
import functools

import jax
import jax.numpy as jnp
from jax.experimental import pallas as pl
from jax.experimental.pallas import tpu as pltpu


def _round_up(x, m):
    return ((x + m - 1) // m) * m


def _contrastive_loss_kernel(img1_ref, img2_ref, label_ref, psum_ref, *,
                             margin, batch, block_b):
    eps = 1e-6  # F.pairwise_distance default eps, added to the elementwise diff
    x1 = img1_ref[...].astype(jnp.float32)                     # (TB, D)
    x2 = img2_ref[...].astype(jnp.float32)                     # (TB, D)
    diff = x1 - x2 + eps
    sumsq = jnp.sum(diff * diff, axis=-1, keepdims=True)        # (TB, 1) = d^2
    d = jnp.sqrt(sumsq)                                         # l2_norm (EUP)
    label = label_ref[...].astype(jnp.float32)                  # (TB, 1)
    hinge = jnp.maximum(margin - d, 0.0)
    per_example = (1.0 - label) * sumsq + label * (hinge * hinge)  # (TB, 1)

    # Mask rows of a partial last block (garbage past B must not enter the sum;
    # jnp.where is robust even if the padded rows contain NaN/Inf).
    row = jax.lax.broadcasted_iota(jnp.int32, per_example.shape, 0)
    global_row = pl.program_id(0) * block_b + row
    per_example = jnp.where(global_row < batch, per_example, 0.0)

    psum = jnp.sum(per_example)
    # Lane-dense (1,1,128) partial-sum block; the wrapper reads lane 0.
    psum_ref[...] = jnp.full((1, 1, 128), psum, dtype=jnp.float32)


def contrastive_loss(img1, img2, label, margin=2.0, block_b=512):
    """img1, img2: (B, D) float/bf16; label: (B,) or (B, 1) float-castable."""
    B, D = img1.shape
    label = jnp.asarray(label, dtype=jnp.float32).reshape(B, 1)

    # Batch tile: multiple of 8 sublanes, capped by B and ~2 MiB per input
    # buffer (x2 inputs x2 pipeline buffers stays well under scoped VMEM).
    vmem_cap_rows = max(8, ((2 * 1024 * 1024) // (D * 4)) // 8 * 8)
    tb = max(8, min(_round_up(B, 8), _round_up(block_b, 8), vmem_cap_rows))
    grid_b = pl.cdiv(B, tb)
    # TODO(synk): if D is huge (feature dim alone overflows VMEM), split D as an
    # inner 'arbitrary' reduction axis instead of shrinking the batch tile.

    kernel = functools.partial(
        _contrastive_loss_kernel, margin=float(margin), batch=B, block_b=tb)

    partials = pl.pallas_call(
        kernel,
        out_shape=jax.ShapeDtypeStruct((grid_b, 1, 128), jnp.float32),
        grid=(grid_b,),
        in_specs=[
            pl.BlockSpec((tb, D), lambda i: (i, 0)),   # img1 tile
            pl.BlockSpec((tb, D), lambda i: (i, 0)),   # img2 tile
            pl.BlockSpec((tb, 1), lambda i: (i, 0)),   # label tile
        ],
        out_specs=pl.BlockSpec((1, 1, 128), lambda i: (i, 0, 0)),
        compiler_params=pltpu.CompilerParams(
            dimension_semantics=("parallel",)),
    )(img1, img2, label)

    total = jnp.sum(partials[:, 0, 0])
    return 0.5 * total / B


def _reference_loss(img1, img2, label, margin=2.0):
    eps = 1e-6
    x1 = img1.astype(jnp.float32)
    x2 = img2.astype(jnp.float32)
    d = jnp.sqrt(jnp.sum((x1 - x2 + eps) ** 2, axis=-1, keepdims=True))
    label = jnp.asarray(label, dtype=jnp.float32).reshape(-1, 1)
    hinge = jnp.maximum(margin - d, 0.0)
    return 0.5 * jnp.mean((1.0 - label) * d * d + label * hinge * hinge)


if __name__ == "__main__":
    key = jax.random.PRNGKey(0)

    # Case 1: small f32, single block (B multiple of 8).
    k1, k2, k3 = jax.random.split(jax.random.fold_in(key, 0), 3)
    B, D = 8, 32
    img1 = jax.random.normal(k1, (B, D), dtype=jnp.float32)
    img2 = jax.random.normal(k2, (B, D), dtype=jnp.float32)
    label = jax.random.bernoulli(k3, p=0.5, shape=(B, 1)).astype(jnp.float32)
    loss = contrastive_loss(img1, img2, label, margin=2.0)
    jax.block_until_ready(loss)
    ref = _reference_loss(img1, img2, label, margin=2.0)
    assert jnp.allclose(loss, ref, rtol=1e-5, atol=1e-5), (loss, ref)

    # Case 2: f32, B not a multiple of the tile -> exercises the row mask.
    k1, k2, k3 = jax.random.split(jax.random.fold_in(key, 1), 3)
    B, D = 37, 160
    img1 = jax.random.normal(k1, (B, D), dtype=jnp.float32)
    img2 = jax.random.normal(k2, (B, D), dtype=jnp.float32)
    label = jax.random.bernoulli(k3, p=0.5, shape=(B,)).astype(jnp.float32)
    loss = contrastive_loss(img1, img2, label, margin=2.0)
    jax.block_until_ready(loss)
    ref = _reference_loss(img1, img2, label, margin=2.0)
    assert jnp.allclose(loss, ref, rtol=1e-5, atol=1e-5), (loss, ref)

    # Case 3: bf16 inputs stay bf16 over HBM; cast to f32 happens in-kernel.
    k1, k2, k3 = jax.random.split(jax.random.fold_in(key, 2), 3)
    B, D = 16, 128
    img1 = jax.random.normal(k1, (B, D), dtype=jnp.bfloat16)
    img2 = jax.random.normal(k2, (B, D), dtype=jnp.bfloat16)
    label = jax.random.bernoulli(k3, p=0.5, shape=(B, 1)).astype(jnp.float32)
    loss = contrastive_loss(img1, img2, label, margin=2.0)
    jax.block_until_ready(loss)
    ref = _reference_loss(img1, img2, label, margin=2.0)
    assert jnp.allclose(loss, ref, rtol=1e-4, atol=1e-4), (loss, ref)

    print("KERNEL_OK")
</pallas_src>

<mosaic_0001>
module attributes {stable_mosaic.version = 11 : i64} {
  func.func @_contrastive_loss_kernel(%arg0: i32, %arg1: memref<8x32xf32, #tpu.memory_space<vmem>>, %arg2: memref<8x32xf32, #tpu.memory_space<vmem>>, %arg3: memref<8x1xf32, #tpu.memory_space<vmem>>, %arg4: memref<1x1x128xf32, #tpu.memory_space<vmem>>) attributes {dimension_semantics = [#tpu.dimension_semantics<parallel>], iteration_bounds = array<i64: 1>, scalar_prefetch = 0 : i64, scratch_operands = 0 : i64, tpu.core_type = #tpu.core_type<tc>, window_params = [{transform_indices = @transform_0, window_bounds = array<i64: 8, 32>}, {transform_indices = @transform_1, window_bounds = array<i64: 8, 32>}, {transform_indices = @transform_2, window_bounds = array<i64: 8, 1>}, {transform_indices = @transform_3, window_bounds = array<i64: 1, 1, 128>}]} {
    %c0 = arith.constant 0 : index
    %c0_0 = arith.constant 0 : index
    %0 = vector.load %arg1[%c0, %c0_0] : memref<8x32xf32, #tpu.memory_space<vmem>>, vector<8x32xf32>
    %c0_1 = arith.constant 0 : index
    %c0_2 = arith.constant 0 : index
    %1 = vector.load %arg2[%c0_1, %c0_2] : memref<8x32xf32, #tpu.memory_space<vmem>>, vector<8x32xf32>
    %2 = arith.subf %0, %1 : vector<8x32xf32>
    %cst = arith.constant 9.99999997E-7 : f32
    %3 = vector.broadcast %cst : f32 to vector<8x32xf32>
    %4 = arith.addf %2, %3 : vector<8x32xf32>
    %5 = arith.mulf %4, %4 : vector<8x32xf32>
    %cst_3 = arith.constant dense<0.000000e+00> : vector<8xf32>
    %6 = vector.multi_reduction <add>, %5, %cst_3 [1] : vector<8x32xf32> to vector<8xf32>
    %7 = vector.shape_cast %6 : vector<8xf32> to vector<8x1xf32>
    %8 = math.sqrt %7 : vector<8x1xf32>
    %c0_4 = arith.constant 0 : index
    %c0_5 = arith.constant 0 : index
    %9 = vector.load %arg3[%c0_4, %c0_5] : memref<8x1xf32, #tpu.memory_space<vmem>>, vector<8x1xf32>
    %cst_6 = arith.constant 2.000000e+00 : f32
    %10 = vector.broadcast %cst_6 : f32 to vector<8x1xf32>
    %11 = arith.subf %10, %8 : vector<8x1xf32>
    %cst_7 = arith.constant 0.000000e+00 : f32
    %12 = vector.broadcast %cst_7 : f32 to vector<8x1xf32>
    %13 = arith.maximumf %11, %12 : vector<8x1xf32>
    %cst_8 = arith.constant 1.000000e+00 : f32
    %14 = vector.broadcast %cst_8 : f32 to vector<8x1xf32>
    %15 = arith.subf %14, %9 : vector<8x1xf32>
    %16 = arith.mulf %15, %7 : vector<8x1xf32>
    %17 = arith.mulf %13, %13 : vector<8x1xf32>
    %18 = arith.mulf %9, %17 : vector<8x1xf32>
    %19 = arith.addf %16, %18 : vector<8x1xf32>
    %20 = tpu.iota {dimensions = array<i32: 0>} : vector<8x1xi32>
    %c8_i32 = arith.constant 8 : i32
    %21 = arith.muli %arg0, %c8_i32 : i32
    %22 = vector.broadcast %21 : i32 to vector<8x1xi32>
    %23 = arith.addi %22, %20 : vector<8x1xi32>
    %c8_i32_9 = arith.constant 8 : i32
    %24 = vector.broadcast %c8_i32_9 : i32 to vector<8x1xi32>
    %25 = arith.cmpi slt, %23, %24 : vector<8x1xi32>
    %cst_10 = arith.constant 0.000000e+00 : f32
    %26 = vector.broadcast %cst_10 : f32 to vector<8x1xf32>
    %27 = arith.select %25, %19, %26 : vector<8x1xi1>, vector<8x1xf32>
    %28 = vector.shape_cast %27 : vector<8x1xf32> to vector<1x8x1xf32>
    %cst_11 = arith.constant dense<0.000000e+00> : vector<1xf32>
    %29 = vector.multi_reduction <add>, %28, %cst_11 [1, 2] : vector<1x8x1xf32> to vector<1xf32>
    %30 = vector.shape_cast %29 : vector<1xf32> to vector<1x1x1xf32>
    %31 = vector.extract %30[0, 0, 0] : f32 from vector<1x1x1xf32>
    %32 = vector.broadcast %31 : f32 to vector<1x1x128xf32>
    %c0_12 = arith.constant 0 : index
    %c0_13 = arith.constant 0 : index
    %c0_14 = arith.constant 0 : index
    %33 = vector.load %arg4[%c0_12, %c0_13, %c0_14] : memref<1x1x128xf32, #tpu.memory_space<vmem>>, vector<1x1x128xf32>
    tpu.vector_store %arg4[%c0_12, %c0_13, %c0_14], %32 {strides = array<i32>} : memref<1x1x128xf32, #tpu.memory_space<vmem>>, vector<1x1x128xf32>,
    return
  }
  func.func @transform_0(%arg0: i32) -> (i32, i32) {
    %c0_i32 = arith.constant 0 : i32
    %c0_i32_0 = arith.constant 0 : i32
    return %arg0, %c0_i32 : i32, i32
  }
  func.func @transform_1(%arg0: i32) -> (i32, i32) {
    %c0_i32 = arith.constant 0 : i32
    %c0_i32_0 = arith.constant 0 : i32
    return %arg0, %c0_i32 : i32, i32
  }
  func.func @transform_2(%arg0: i32) -> (i32, i32) {
    %c0_i32 = arith.constant 0 : i32
    %c0_i32_0 = arith.constant 0 : i32
    return %arg0, %c0_i32 : i32, i32
  }
  func.func @transform_3(%arg0: i32) -> (i32, i32, i32) {
    %c0_i32 = arith.constant 0 : i32
    %c0_i32_0 = arith.constant 0 : i32
    %c0_i32_1 = arith.constant 0 : i32
    return %arg0, %c0_i32, %c0_i32_0 : i32, i32, i32
  }
}

</mosaic_0001>

<bundles_post_ra>
// kernel: tpu_custom_call.1
= control target key start
LH: loop header
LB: loop body
LE: loop exit
PB: predicated region body
PF: predicated region fallthrough
CT: control target
= control target key end

     0   :  { %8 = vsyncpa [#allocation3], 0  ;;  %s192_s0 = inlined_call_operand.vmem [shape: f32[8,32], index: 0, kind: input, shape index: {}]   ;;  %s193_s1 = inlined_call_operand.hbm [shape: f32[8,32], index: 1, kind: input, shape index: {}]   ;;  %s194_s2 = inlined_call_operand.vmem [shape: f32[8,1], index: 2, kind: input, shape index: {}]   ;;  %s195_s3 = inlined_call_operand.hbm [shape: f32[1,1,128], index: 3, kind: output, shape index: {}]  }
   0x1   :  { %9 = vsyncpa [#allocation4], 0  ;;  %s140_s12 = smov [#allocation2]   ;;  %s92_s16 = scalar_lea.hbm %s193_s1, 128 }
   0x2   :  { %s18_s13 = sshll.u32 %s140_s12, 4  ;;  %p93_p0 = scmp.ne.s32.totalorder %s193_s1, %s92_s16  ;;  %s19_s13 = int_to_ptr.vmem [resolvable:$true] %s18_s13 }
   0x3   :  { %p96_p1 = scmp.lt.u32.totalorder %s92_s16, %s193_s1 }
   0x5   :  { %p98_p2 = pnand %p96_p1, %p93_p0 }
   0x7   :  { %101 = shalt.err (!%p98_p2)
}
   0x8   :  { %s102_s21 = scalar_lea.vmem %s19_s13, 128  ;;  %p107_p4 = scmp.lt.s32.totalorder %s19_s13, %s19_s13 }
   0x9   :  { %p103_p3 = scmp.ne.s32.totalorder %s19_s13, %s102_s21  ;;  %p108_p5 = scmp.lt.s32.totalorder %s102_s21, %s102_s21 }
   0xb   :  { %p109_p6 = por %p108_p5, %p107_p4 }
   0xd   :  { %p110_p7 = pnand %p109_p6, %p103_p3 }
   0xf   :  { %113 = shalt.err (!%p110_p7)
}
  0x10   :  { %21 = dma.hbm_to_vmem [thread:$0]  %s193_s1, 128, %s19_s13, [#allocation3]  }
  0x11   :  { %136 = dma.done.wait [#allocation3], 128  }
  0x12   :  { %137 = vsyncadd [#allocation3], 4294967168  ;;  %v27_v0 = vld [vmem:[%s192_s0] sm:$0xff]  ;;  %vm32_vm0 = vcmask 261120   ;;  %vm58_vm3 = vcmask 7168   ;;  %s141_s0 = smov [#allocation5]  }
  0x13   :  { %v28_v1 = vld [vmem:[#allocation2] sm:$0xff] }
  0x14   :  { %v29_v2 = vsub.f32 %v27_v0, %v28_v1  ;;  %v43_v12 = vld [vmem:[%s194_s2] sm:$0xff]  ;;  %s77_s2 = sshll.u32 %s141_s0, 4  ;;  %s78_s2 = int_to_ptr.vmem [resolvable:$true] %s77_s2 }
  0x15   :  { %v46_v15 = vsub.f32 1.0, %v43_v12  ;;  %s114_s28 = scalar_lea.vmem %s78_s2, 16  ;;  %s118_s29 = scalar_lea.vmem %s78_s2, 32 }
  0x16   :  { %v30_v3 = vadd.f32 1e-06, %v29_v2  ;;  %p115_p8 = scmp.ne.s32.totalorder %s78_s2, %s114_s28  ;;  %p119_p9 = scmp.lt.s32.totalorder %s78_s2, %s78_s2 }
  0x17   :  { %p120_p10 = scmp.lt.s32.totalorder %s118_s29, %s114_s28 }
  0x18   :  { %v31_v4 = vmul.f32 %v30_v3, %v30_v3 }
  0x19   :  { %p121_p11 = por %p120_p10, %p119_p9 }
  0x1a   :  { %v33_v5 = vsel %vm32_vm0, %v31_v4, 0.0 }
  0x1b   :  { %34 = vadd.xlane.f32.xlu0 %v33_v5  ;;  %p122_p12 = pnand %p121_p11, %p115_p8 }
  0xa8   :  { %v35_v6 = vpop.xlane.xlu0 %34 }
  0xa9   :  { %90 = vrsqrt.f32 %v35_v6  ;;  %vm38_vm1 = vcmp.eq.f32.partialorder %v35_v6, inf  ;;  %v41_v9 = vand.u32 2147483648, %v35_v6  ;;  %vm40_vm2 = vcmp.eq.f32.partialorder %v35_v6, 0.0 }
  0xaa   :  { %v47_v17 = vmul.f32 %v46_v15, %v35_v6 }
  0xb3   :  { %v91_v7 = vpop.eup %90 }
  0xb4   :  { %v37_v8 = vmul.f32 %v91_v7, %v35_v6 }
  0xb6   :  { %v39_v10 = vsel %vm38_vm1, %v35_v6, %v37_v8 }
  0xb7   :  { %v42_v11 = vsel %vm40_vm2, %v41_v9, %v39_v10 }
  0xb8   :  { %v44_v13 = vsub.f32 2.0, %v42_v11 }
  0xba   :  { %v45_v14 = vmax.f32 %v44_v13, 0.0 }
  0xbc   :  { %v48_v16 = vmul.f32 %v45_v14, %v45_v14 }
  0xbe   :  { %v49_v18 = vmul.f32 %v48_v16, %v43_v12 }
  0xc0   :  { %v50_v19 = vadd.f32 %v49_v18, %v47_v17 }
  0xc2   :  { %v59_v20 = vsel %vm58_vm3, %v50_v19, 0.0 }
  0xc3   :  { %60 = vadd.xlane.f32.xlu0 %v59_v20 }
 0x150   :  { %v61_v21 = vpop.xlane.xlu0 %60 }
 0x151   :  { %v62_v22 = vrot.slane %v61_v21, 4 }
 0x153   :  { %v63_v23 = vadd.f32 %v62_v22, %v61_v21 }
 0x155   :  { %v64_v24 = vrot.slane %v63_v23, 2 }
 0x157   :  { %v65_v25 = vadd.f32 %v64_v24, %v63_v23 }
 0x159   :  { %v66_v26 = vrot.slane %v65_v25, 1 }
 0x15b   :  { %v67_v27 = vadd.f32 %v66_v26, %v65_v25 }
 0x15d   :  { %86 = vpush %v67_v27 }
 0x18e   :  { %s87_s27 = spop %86 }
 0x18f   :  { %v69_v28 = vstv %s87_s27 }
 0x190   :  { %70 = vst [vmem:[#allocation5] sm:$0x1] %v69_v28 }
 0x191   :  { %125 = shalt.err (!%p122_p12)
}
 0x192   :  { %s126_s5 = scalar_lea.hbm %s195_s3, 16 }
 0x193   :  { %p127_p13 = scmp.ne.s32.totalorder %s195_s3, %s126_s5  ;;  %p130_p0 = scmp.lt.u32.totalorder %s126_s5, %s195_s3 }
 0x195   :  { %p132_p1 = pnand %p130_p0, %p127_p13 }
 0x197   :  { %135 = shalt.err (!%p132_p1)
}
 0x198   :  { %80 = dma.vmem_to_hbm [thread:$0]  %s78_s2, 16, %s195_s3, [#allocation4]  }
 0x199   :  { %138 = dma.done.wait [#allocation4], 16  }
 0x19a   :  { %139 = vsyncadd [#allocation4], 4294967280 }
 0x19b   :  { %84 = vsyncpa [#allocation3], 1 }
 0x19c   :  { %85 = vsyncpa [#allocation4], 1 }

</bundles_post_ra>
